<compile_context>
chip_gen: v5e
topology: v5e:2x2
jax: 0.10.0
libtpu: 0.0.40
codegen_flags: <defaults>
</compile_context>

<pallas_src>
import jax
import jax.numpy as jnp
from jax.experimental import pallas as pl
from jax.experimental.pallas import tpu as pltpu


def _lstm_chunk_kernel(gx_ref, whh_ref, h_out_ref, h_scr, c_scr):
    """One time-chunk of the LSTM recurrence for one batch shard.

    gx_ref   : (T_chunk, B_shard, 4H) input-side gate pre-activations
    whh_ref  : (H, 4H)                recurrent weight (PyTorch gate order i,f,g,o)
    h_out_ref: (B_shard, H)           last hidden state (written on last chunk)
    h_scr/c_scr: (B_shard, H)         recurrent state, persists across chunks
    """
    chunk_idx = pl.program_id(1)

    @pl.when(chunk_idx == 0)
    def _():
        h_scr[...] = jnp.zeros_like(h_scr)
        c_scr[...] = jnp.zeros_like(c_scr)

    H = h_scr.shape[1]
    n_steps = gx_ref.shape[0]
    w_hh = whh_ref[...]                       # load once per chunk, reuse every step

    def step(t, carry):
        h, c = carry
        # Only the irreducible recurrent matmul sits on the serial critical path.
        gates = gx_ref[t] + jnp.dot(h, w_hh, preferred_element_type=jnp.float32)
        # With H a multiple of 128 these slices are free vreg-boundary views;
        # at toy sizes (H=32) they are masked lane selects (unavoidable).
        i_g = jax.nn.sigmoid(gates[:, 0 * H:1 * H])
        f_g = jax.nn.sigmoid(gates[:, 1 * H:2 * H])
        g_g = jnp.tanh(gates[:, 2 * H:3 * H])
        o_g = jax.nn.sigmoid(gates[:, 3 * H:4 * H])
        c = f_g * c + i_g * g_g
        h = o_g * jnp.tanh(c)
        return (h, c)

    h, c = jax.lax.fori_loop(0, n_steps, step, (h_scr[...], c_scr[...]),
                             unroll=True)
    h_scr[...] = h
    c_scr[...] = c

    @pl.when(chunk_idx == pl.num_programs(1) - 1)
    def _():
        h_out_ref[...] = h


def _largest_divisor_leq(n, cap):
    for c in range(min(n, cap), 0, -1):
        if n % c == 0:
            return c
    return 1


def sentiment_rnn_forward(x_tokens, params, *, max_time_chunk=32):
    """x_tokens: (seq_len, batch) int32 token ids (seq-major, like nn.LSTM)."""
    emb = params["embedding"]          # (V, E)
    w_ih = params["w_ih"]              # (E, 4H)   (transposed PyTorch weight_ih_l0)
    w_hh = params["w_hh"]              # (H, 4H)   (transposed PyTorch weight_hh_l0)
    b = params["b"]                    # (1, 4H)   (b_ih + b_hh)
    fc_w = params["fc_w"]              # (H, O)    (transposed PyTorch fc.weight)
    fc_b = params["fc_b"]              # (1, O)

    S, B = x_tokens.shape
    H = w_hh.shape[0]

    # Fuse embedding with the input projection: one (V,E)@(E,4H) matmul with the
    # bias folded in, computed once outside the recurrence. The per-token gather
    # then directly yields the input-side gate pre-activations.
    # TODO(synk): the data-dependent row gather stays in XLA; a rectangular
    # BlockSpec cannot express it (would need a manual DMA-gather kernel).
    fused_table = emb @ w_ih + b                        # (V, 4H)
    gates_x = jnp.take(fused_table, x_tokens, axis=0)   # (S, B, 4H) float32

    # Time chunking: amortizes per-grid-step overhead over `time_chunk` steps
    # while keeping the streamed gates_x block small enough for VMEM.
    time_chunk = _largest_divisor_leq(S, max_time_chunk)
    n_chunks = S // time_chunk

    # Batch sharding across TensorCores (v7x has 2 TCs). Only shard when each
    # shard remains a multiple of 8 sublanes; otherwise a single shard.
    n_bshards = 2 if (B % 16 == 0) else 1
    b_shard = B // n_bshards

    grid_spec = pltpu.PrefetchScalarGridSpec(
        num_scalar_prefetch=0,
        grid=(n_bshards, n_chunks),
        in_specs=[
            pl.BlockSpec((time_chunk, b_shard, 4 * H),
                         lambda bi, ci: (ci, bi, 0)),         # gates_x chunk
            pl.BlockSpec((H, 4 * H), lambda bi, ci: (0, 0)),  # W_hh (resident)
        ],
        out_specs=pl.BlockSpec((b_shard, H), lambda bi, ci: (bi, 0)),
        scratch_shapes=[
            pltpu.VMEM((b_shard, H), jnp.float32),   # h state
            pltpu.VMEM((b_shard, H), jnp.float32),   # c state
        ],
    )

    h_last = pl.pallas_call(
        _lstm_chunk_kernel,
        out_shape=jax.ShapeDtypeStruct((B, H), jnp.float32),
        grid_spec=grid_spec,
        compiler_params=pltpu.CompilerParams(
            dimension_semantics=("parallel", "arbitrary")),  # batch || , time serial
    )(gates_x, w_hh)

    # Final Linear on the last timestep's hidden state: tiny matmul, left to XLA.
    return h_last @ fc_w + fc_b


def init_params(key, vocab_size, embed_size, hidden_size, output_size):
    ks = jax.random.split(key, 7)
    scale = 0.1
    embedding = scale * jax.random.normal(ks[0], (vocab_size, embed_size), jnp.float32)
    # PyTorch stores weight_ih_l0 as (4H, E); we keep the transposed (E, 4H).
    w_ih = scale * jax.random.normal(ks[1], (embed_size, 4 * hidden_size), jnp.float32)
    w_hh = scale * jax.random.normal(ks[2], (hidden_size, 4 * hidden_size), jnp.float32)
    b_ih = scale * jax.random.normal(ks[3], (4 * hidden_size,), jnp.float32)
    b_hh = scale * jax.random.normal(ks[4], (4 * hidden_size,), jnp.float32)
    fc_w = scale * jax.random.normal(ks[5], (hidden_size, output_size), jnp.float32)
    fc_b = scale * jax.random.normal(ks[6], (output_size,), jnp.float32)
    return {
        "embedding": embedding,
        "w_ih": w_ih,
        "w_hh": w_hh,
        "b": (b_ih + b_hh).reshape(1, -1),
        "fc_w": fc_w,
        "fc_b": fc_b.reshape(1, -1),
    }


def _reference_forward(x_tokens, params):
    """Pure-JAX reference reproducing PyTorch semantics (for sanity check)."""
    emb = params["embedding"][x_tokens]          # (S, B, E)
    H = params["w_hh"].shape[0]
    B = x_tokens.shape[1]
    h = jnp.zeros((B, H), jnp.float32)
    c = jnp.zeros((B, H), jnp.float32)

    def step(carry, x_t):
        h, c = carry
        gates = x_t @ params["w_ih"] + h @ params["w_hh"] + params["b"]
        i = jax.nn.sigmoid(gates[:, 0 * H:1 * H])
        f = jax.nn.sigmoid(gates[:, 1 * H:2 * H])
        g = jnp.tanh(gates[:, 2 * H:3 * H])
        o = jax.nn.sigmoid(gates[:, 3 * H:4 * H])
        c = f * c + i * g
        h = o * jnp.tanh(c)
        return (h, c), None

    (h, c), _ = jax.lax.scan(step, (h, c), emb)
    return h @ params["fc_w"] + params["fc_b"]


if __name__ == "__main__":
    vocab_size, embed_size, hidden_size, output_size = 100, 32, 32, 4
    seq_len, batch = 8, 8

    key = jax.random.PRNGKey(0)
    k_param, k_tok = jax.random.split(key)
    params = init_params(k_param, vocab_size, embed_size, hidden_size, output_size)
    x_tokens = jax.random.randint(k_tok, (seq_len, batch), 0, vocab_size, dtype=jnp.int32)

    out = sentiment_rnn_forward(x_tokens, params)
    out = jax.block_until_ready(out)

    ref = _reference_forward(x_tokens, params)
    assert out.shape == (batch, output_size)
    assert jnp.allclose(out, ref, atol=1e-4, rtol=1e-4), "mismatch vs reference"

    print("KERNEL_OK")
</pallas_src>

<mosaic_0001>
module attributes {stable_mosaic.version = 11 : i64} {
  func.func @_lstm_chunk_kernel(%arg0: i32, %arg1: i32, %arg2: memref<8x8x128xf32, #tpu.memory_space<vmem>>, %arg3: memref<32x128xf32, #tpu.memory_space<vmem>>, %arg4: memref<8x32xf32, #tpu.memory_space<vmem>>, %arg5: memref<8x32xf32, #tpu.memory_space<vmem>>, %arg6: memref<8x32xf32, #tpu.memory_space<vmem>>) attributes {dimension_semantics = [#tpu.dimension_semantics<parallel>, #tpu.dimension_semantics<arbitrary>], iteration_bounds = array<i64: 1, 1>, scalar_prefetch = 0 : i64, scratch_operands = 2 : i64, tpu.core_type = #tpu.core_type<tc>, window_params = [{transform_indices = @transform_0, window_bounds = array<i64: 8, 8, 128>}, {pipeline_mode = #tpu.pipeline_mode<synchronous>, transform_indices = @transform_1, window_bounds = array<i64: 32, 128>}, {transform_indices = @transform_2, window_bounds = array<i64: 8, 32>}]} {
    %c0_i32 = arith.constant 0 : i32
    %0 = arith.cmpi eq, %arg1, %c0_i32 : i32
    %1 = arith.extui %0 : i1 to i32
    %c0_i32_0 = arith.constant 0 : i32
    %2 = arith.cmpi ne, %1, %c0_i32_0 : i32
    scf.if %2 {
      %cst_60 = arith.constant 0.000000e+00 : f32
      %251 = vector.broadcast %cst_60 : f32 to vector<8x32xf32>
      %c0_61 = arith.constant 0 : index
      %c0_62 = arith.constant 0 : index
      %252 = vector.load %arg5[%c0_61, %c0_62] : memref<8x32xf32, #tpu.memory_space<vmem>>, vector<8x32xf32>
      tpu.vector_store %arg5[%c0_61, %c0_62], %251 {strides = array<i32>} : memref<8x32xf32, #tpu.memory_space<vmem>>, vector<8x32xf32>,
      %cst_63 = arith.constant 0.000000e+00 : f32
      %253 = vector.broadcast %cst_63 : f32 to vector<8x32xf32>
      %c0_64 = arith.constant 0 : index
      %c0_65 = arith.constant 0 : index
      %254 = vector.load %arg6[%c0_64, %c0_65] : memref<8x32xf32, #tpu.memory_space<vmem>>, vector<8x32xf32>
      tpu.vector_store %arg6[%c0_64, %c0_65], %253 {strides = array<i32>} : memref<8x32xf32, #tpu.memory_space<vmem>>, vector<8x32xf32>,
    } else {
    }
    %c0 = arith.constant 0 : index
    %c0_1 = arith.constant 0 : index
    %3 = vector.load %arg3[%c0, %c0_1] : memref<32x128xf32, #tpu.memory_space<vmem>>, vector<32x128xf32>
    %c0_2 = arith.constant 0 : index
    %c0_3 = arith.constant 0 : index
    %4 = vector.load %arg5[%c0_2, %c0_3] : memref<8x32xf32, #tpu.memory_space<vmem>>, vector<8x32xf32>
    %c0_4 = arith.constant 0 : index
    %c0_5 = arith.constant 0 : index
    %5 = vector.load %arg6[%c0_4, %c0_5] : memref<8x32xf32, #tpu.memory_space<vmem>>, vector<8x32xf32>
    %c0_i32_6 = arith.constant 0 : i32
    %6 = arith.index_cast %c0_i32_6 : i32 to index
    %c0_7 = arith.constant 0 : index
    %c0_8 = arith.constant 0 : index
    %7 = vector.load %arg2[%6, %c0_7, %c0_8] : memref<8x8x128xf32, #tpu.memory_space<vmem>>, vector<1x8x128xf32>
    %8 = vector.shape_cast %7 : vector<1x8x128xf32> to vector<8x128xf32>
    %cst = arith.constant dense<0.000000e+00> : vector<8x128xf32>
    %9 = tpu.matmul %4, %3, %cst {dimension_numbers = #tpu.dot_dimension_numbers<[1], [0], [0], [1], [0, 0, 1, 1], [], []>} : vector<8x32xf32>, vector<32x128xf32>, vector<8x128xf32> -> vector<8x128xf32>
    %10 = arith.addf %8, %9 : vector<8x128xf32>
    %11 = vector.extract_strided_slice %10 {offsets = [0, 0], sizes = [8, 32], strides = [1, 1]} : vector<8x128xf32> to vector<8x32xf32>
    %12 = arith.negf %11 : vector<8x32xf32>
    %13 = math.exp %12 : vector<8x32xf32>
    %cst_9 = arith.constant 1.000000e+00 : f32
    %14 = vector.broadcast %cst_9 : f32 to vector<8x32xf32>
    %15 = arith.addf %14, %13 : vector<8x32xf32>
    %16 = arith.divf %14, %15 : vector<8x32xf32>
    %17 = vector.extract_strided_slice %10 {offsets = [0, 32], sizes = [8, 32], strides = [1, 1]} : vector<8x128xf32> to vector<8x32xf32>
    %18 = arith.negf %17 : vector<8x32xf32>
    %19 = math.exp %18 : vector<8x32xf32>
    %cst_10 = arith.constant 1.000000e+00 : f32
    %20 = vector.broadcast %cst_10 : f32 to vector<8x32xf32>
    %21 = arith.addf %20, %19 : vector<8x32xf32>
    %22 = arith.divf %20, %21 : vector<8x32xf32>
    %23 = vector.extract_strided_slice %10 {offsets = [0, 64], sizes = [8, 32], strides = [1, 1]} : vector<8x128xf32> to vector<8x32xf32>
    %24 = math.tanh %23 : vector<8x32xf32>
    %25 = vector.extract_strided_slice %10 {offsets = [0, 96], sizes = [8, 32], strides = [1, 1]} : vector<8x128xf32> to vector<8x32xf32>
    %26 = arith.negf %25 : vector<8x32xf32>
    %27 = math.exp %26 : vector<8x32xf32>
    %cst_11 = arith.constant 1.000000e+00 : f32
    %28 = vector.broadcast %cst_11 : f32 to vector<8x32xf32>
    %29 = arith.addf %28, %27 : vector<8x32xf32>
    %30 = arith.divf %28, %29 : vector<8x32xf32>
    %31 = arith.mulf %22, %5 : vector<8x32xf32>
    %32 = arith.mulf %16, %24 : vector<8x32xf32>
    %33 = arith.addf %31, %32 : vector<8x32xf32>
    %34 = math.tanh %33 : vector<8x32xf32>
    %35 = arith.mulf %30, %34 : vector<8x32xf32>
    %c1_i32 = arith.constant 1 : i32
    %36 = arith.index_cast %c1_i32 : i32 to index
    %c0_12 = arith.constant 0 : index
    %c0_13 = arith.constant 0 : index
    %37 = vector.load %arg2[%36, %c0_12, %c0_13] : memref<8x8x128xf32, #tpu.memory_space<vmem>>, vector<1x8x128xf32>
    %38 = vector.shape_cast %37 : vector<1x8x128xf32> to vector<8x128xf32>
    %cst_14 = arith.constant dense<0.000000e+00> : vector<8x128xf32>
    %39 = tpu.matmul %35, %3, %cst_14 {dimension_numbers = #tpu.dot_dimension_numbers<[1], [0], [0], [1], [0, 0, 1, 1], [], []>} : vector<8x32xf32>, vector<32x128xf32>, vector<8x128xf32> -> vector<8x128xf32>
    %40 = arith.addf %38, %39 : vector<8x128xf32>
    %41 = vector.extract_strided_slice %40 {offsets = [0, 0], sizes = [8, 32], strides = [1, 1]} : vector<8x128xf32> to vector<8x32xf32>
    %42 = arith.negf %41 : vector<8x32xf32>
    %43 = math.exp %42 : vector<8x32xf32>
    %cst_15 = arith.constant 1.000000e+00 : f32
    %44 = vector.broadcast %cst_15 : f32 to vector<8x32xf32>
    %45 = arith.addf %44, %43 : vector<8x32xf32>
    %46 = arith.divf %44, %45 : vector<8x32xf32>
    %47 = vector.extract_strided_slice %40 {offsets = [0, 32], sizes = [8, 32], strides = [1, 1]} : vector<8x128xf32> to vector<8x32xf32>
    %48 = arith.negf %47 : vector<8x32xf32>
    %49 = math.exp %48 : vector<8x32xf32>
    %cst_16 = arith.constant 1.000000e+00 : f32
    %50 = vector.broadcast %cst_16 : f32 to vector<8x32xf32>
    %51 = arith.addf %50, %49 : vector<8x32xf32>
    %52 = arith.divf %50, %51 : vector<8x32xf32>
    %53 = vector.extract_strided_slice %40 {offsets = [0, 64], sizes = [8, 32], strides = [1, 1]} : vector<8x128xf32> to vector<8x32xf32>
    %54 = math.tanh %53 : vector<8x32xf32>
    %55 = vector.extract_strided_slice %40 {offsets = [0, 96], sizes = [8, 32], strides = [1, 1]} : vector<8x128xf32> to vector<8x32xf32>
    %56 = arith.negf %55 : vector<8x32xf32>
    %57 = math.exp %56 : vector<8x32xf32>
    %cst_17 = arith.constant 1.000000e+00 : f32
    %58 = vector.broadcast %cst_17 : f32 to vector<8x32xf32>
    %59 = arith.addf %58, %57 : vector<8x32xf32>
    %60 = arith.divf %58, %59 : vector<8x32xf32>
    %61 = arith.mulf %52, %33 : vector<8x32xf32>
    %62 = arith.mulf %46, %54 : vector<8x32xf32>
    %63 = arith.addf %61, %62 : vector<8x32xf32>
    %64 = math.tanh %63 : vector<8x32xf32>
    %65 = arith.mulf %60, %64 : vector<8x32xf32>
    %c2_i32 = arith.constant 2 : i32
    %66 = arith.index_cast %c2_i32 : i32 to index
    %c0_18 = arith.constant 0 : index
    %c0_19 = arith.constant 0 : index
    %67 = vector.load %arg2[%66, %c0_18, %c0_19] : memref<8x8x128xf32, #tpu.memory_space<vmem>>, vector<1x8x128xf32>
    %68 = vector.shape_cast %67 : vector<1x8x128xf32> to vector<8x128xf32>
    %cst_20 = arith.constant dense<0.000000e+00> : vector<8x128xf32>
    %69 = tpu.matmul %65, %3, %cst_20 {dimension_numbers = #tpu.dot_dimension_numbers<[1], [0], [0], [1], [0, 0, 1, 1], [], []>} : vector<8x32xf32>, vector<32x128xf32>, vector<8x128xf32> -> vector<8x128xf32>
    %70 = arith.addf %68, %69 : vector<8x128xf32>
    %71 = vector.extract_strided_slice %70 {offsets = [0, 0], sizes = [8, 32], strides = [1, 1]} : vector<8x128xf32> to vector<8x32xf32>
    %72 = arith.negf %71 : vector<8x32xf32>
    %73 = math.exp %72 : vector<8x32xf32>
    %cst_21 = arith.constant 1.000000e+00 : f32
    %74 = vector.broadcast %cst_21 : f32 to vector<8x32xf32>
    %75 = arith.addf %74, %73 : vector<8x32xf32>
    %76 = arith.divf %74, %75 : vector<8x32xf32>
    %77 = vector.extract_strided_slice %70 {offsets = [0, 32], sizes = [8, 32], strides = [1, 1]} : vector<8x128xf32> to vector<8x32xf32>
    %78 = arith.negf %77 : vector<8x32xf32>
    %79 = math.exp %78 : vector<8x32xf32>
    %cst_22 = arith.constant 1.000000e+00 : f32
    %80 = vector.broadcast %cst_22 : f32 to vector<8x32xf32>
    %81 = arith.addf %80, %79 : vector<8x32xf32>
    %82 = arith.divf %80, %81 : vector<8x32xf32>
    %83 = vector.extract_strided_slice %70 {offsets = [0, 64], sizes = [8, 32], strides = [1, 1]} : vector<8x128xf32> to vector<8x32xf32>
    %84 = math.tanh %83 : vector<8x32xf32>
    %85 = vector.extract_strided_slice %70 {offsets = [0, 96], sizes = [8, 32], strides = [1, 1]} : vector<8x128xf32> to vector<8x32xf32>
    %86 = arith.negf %85 : vector<8x32xf32>
    %87 = math.exp %86 : vector<8x32xf32>
    %cst_23 = arith.constant 1.000000e+00 : f32
    %88 = vector.broadcast %cst_23 : f32 to vector<8x32xf32>
    %89 = arith.addf %88, %87 : vector<8x32xf32>
    %90 = arith.divf %88, %89 : vector<8x32xf32>
    %91 = arith.mulf %82, %63 : vector<8x32xf32>
    %92 = arith.mulf %76, %84 : vector<8x32xf32>
    %93 = arith.addf %91, %92 : vector<8x32xf32>
    %94 = math.tanh %93 : vector<8x32xf32>
    %95 = arith.mulf %90, %94 : vector<8x32xf32>
    %c3_i32 = arith.constant 3 : i32
    %96 = arith.index_cast %c3_i32 : i32 to index
    %c0_24 = arith.constant 0 : index
    %c0_25 = arith.constant 0 : index
    %97 = vector.load %arg2[%96, %c0_24, %c0_25] : memref<8x8x128xf32, #tpu.memory_space<vmem>>, vector<1x8x128xf32>
    %98 = vector.shape_cast %97 : vector<1x8x128xf32> to vector<8x128xf32>
    %cst_26 = arith.constant dense<0.000000e+00> : vector<8x128xf32>
    %99 = tpu.matmul %95, %3, %cst_26 {dimension_numbers = #tpu.dot_dimension_numbers<[1], [0], [0], [1], [0, 0, 1, 1], [], []>} : vector<8x32xf32>, vector<32x128xf32>, vector<8x128xf32> -> vector<8x128xf32>
    %100 = arith.addf %98, %99 : vector<8x128xf32>
    %101 = vector.extract_strided_slice %100 {offsets = [0, 0], sizes = [8, 32], strides = [1, 1]} : vector<8x128xf32> to vector<8x32xf32>
    %102 = arith.negf %101 : vector<8x32xf32>
    %103 = math.exp %102 : vector<8x32xf32>
    %cst_27 = arith.constant 1.000000e+00 : f32
    %104 = vector.broadcast %cst_27 : f32 to vector<8x32xf32>
    %105 = arith.addf %104, %103 : vector<8x32xf32>
    %106 = arith.divf %104, %105 : vector<8x32xf32>
    %107 = vector.extract_strided_slice %100 {offsets = [0, 32], sizes = [8, 32], strides = [1, 1]} : vector<8x128xf32> to vector<8x32xf32>
    %108 = arith.negf %107 : vector<8x32xf32>
    %109 = math.exp %108 : vector<8x32xf32>
    %cst_28 = arith.constant 1.000000e+00 : f32
    %110 = vector.broadcast %cst_28 : f32 to vector<8x32xf32>
    %111 = arith.addf %110, %109 : vector<8x32xf32>
    %112 = arith.divf %110, %111 : vector<8x32xf32>
    %113 = vector.extract_strided_slice %100 {offsets = [0, 64], sizes = [8, 32], strides = [1, 1]} : vector<8x128xf32> to vector<8x32xf32>
    %114 = math.tanh %113 : vector<8x32xf32>
    %115 = vector.extract_strided_slice %100 {offsets = [0, 96], sizes = [8, 32], strides = [1, 1]} : vector<8x128xf32> to vector<8x32xf32>
    %116 = arith.negf %115 : vector<8x32xf32>
    %117 = math.exp %116 : vector<8x32xf32>
    %cst_29 = arith.constant 1.000000e+00 : f32
    %118 = vector.broadcast %cst_29 : f32 to vector<8x32xf32>
    %119 = arith.addf %118, %117 : vector<8x32xf32>
    %120 = arith.divf %118, %119 : vector<8x32xf32>
    %121 = arith.mulf %112, %93 : vector<8x32xf32>
    %122 = arith.mulf %106, %114 : vector<8x32xf32>
    %123 = arith.addf %121, %122 : vector<8x32xf32>
    %124 = math.tanh %123 : vector<8x32xf32>
    %125 = arith.mulf %120, %124 : vector<8x32xf32>
    %c4_i32 = arith.constant 4 : i32
    %126 = arith.index_cast %c4_i32 : i32 to index
    %c0_30 = arith.constant 0 : index
    %c0_31 = arith.constant 0 : index
    %127 = vector.load %arg2[%126, %c0_30, %c0_31] : memref<8x8x128xf32, #tpu.memory_space<vmem>>, vector<1x8x128xf32>
    %128 = vector.shape_cast %127 : vector<1x8x128xf32> to vector<8x128xf32>
    %cst_32 = arith.constant dense<0.000000e+00> : vector<8x128xf32>
    %129 = tpu.matmul %125, %3, %cst_32 {dimension_numbers = #tpu.dot_dimension_numbers<[1], [0], [0], [1], [0, 0, 1, 1], [], []>} : vector<8x32xf32>, vector<32x128xf32>, vector<8x128xf32> -> vector<8x128xf32>
    %130 = arith.addf %128, %129 : vector<8x128xf32>
    %131 = vector.extract_strided_slice %130 {offsets = [0, 0], sizes = [8, 32], strides = [1, 1]} : vector<8x128xf32> to vector<8x32xf32>
    %132 = arith.negf %131 : vector<8x32xf32>
    %133 = math.exp %132 : vector<8x32xf32>
    %cst_33 = arith.constant 1.000000e+00 : f32
    %134 = vector.broadcast %cst_33 : f32 to vector<8x32xf32>
    %135 = arith.addf %134, %133 : vector<8x32xf32>
    %136 = arith.divf %134, %135 : vector<8x32xf32>
    %137 = vector.extract_strided_slice %130 {offsets = [0, 32], sizes = [8, 32], strides = [1, 1]} : vector<8x128xf32> to vector<8x32xf32>
    %138 = arith.negf %137 : vector<8x32xf32>
    %139 = math.exp %138 : vector<8x32xf32>
    %cst_34 = arith.constant 1.000000e+00 : f32
    %140 = vector.broadcast %cst_34 : f32 to vector<8x32xf32>
    %141 = arith.addf %140, %139 : vector<8x32xf32>
    %142 = arith.divf %140, %141 : vector<8x32xf32>
    %143 = vector.extract_strided_slice %130 {offsets = [0, 64], sizes = [8, 32], strides = [1, 1]} : vector<8x128xf32> to vector<8x32xf32>
    %144 = math.tanh %143 : vector<8x32xf32>
    %145 = vector.extract_strided_slice %130 {offsets = [0, 96], sizes = [8, 32], strides = [1, 1]} : vector<8x128xf32> to vector<8x32xf32>
    %146 = arith.negf %145 : vector<8x32xf32>
    %147 = math.exp %146 : vector<8x32xf32>
    %cst_35 = arith.constant 1.000000e+00 : f32
    %148 = vector.broadcast %cst_35 : f32 to vector<8x32xf32>
    %149 = arith.addf %148, %147 : vector<8x32xf32>
    %150 = arith.divf %148, %149 : vector<8x32xf32>
    %151 = arith.mulf %142, %123 : vector<8x32xf32>
    %152 = arith.mulf %136, %144 : vector<8x32xf32>
    %153 = arith.addf %151, %152 : vector<8x32xf32>
    %154 = math.tanh %153 : vector<8x32xf32>
    %155 = arith.mulf %150, %154 : vector<8x32xf32>
    %c5_i32 = arith.constant 5 : i32
    %156 = arith.index_cast %c5_i32 : i32 to index
    %c0_36 = arith.constant 0 : index
    %c0_37 = arith.constant 0 : index
    %157 = vector.load %arg2[%156, %c0_36, %c0_37] : memref<8x8x128xf32, #tpu.memory_space<vmem>>, vector<1x8x128xf32>
    %158 = vector.shape_cast %157 : vector<1x8x128xf32> to vector<8x128xf32>
    %cst_38 = arith.constant dense<0.000000e+00> : vector<8x128xf32>
    %159 = tpu.matmul %155, %3, %cst_38 {dimension_numbers = #tpu.dot_dimension_numbers<[1], [0], [0], [1], [0, 0, 1, 1], [], []>} : vector<8x32xf32>, vector<32x128xf32>, vector<8x128xf32> -> vector<8x128xf32>
    %160 = arith.addf %158, %159 : vector<8x128xf32>
    %161 = vector.extract_strided_slice %160 {offsets = [0, 0], sizes = [8, 32], strides = [1, 1]} : vector<8x128xf32> to vector<8x32xf32>
    %162 = arith.negf %161 : vector<8x32xf32>
    %163 = math.exp %162 : vector<8x32xf32>
    %cst_39 = arith.constant 1.000000e+00 : f32
    %164 = vector.broadcast %cst_39 : f32 to vector<8x32xf32>
    %165 = arith.addf %164, %163 : vector<8x32xf32>
    %166 = arith.divf %164, %165 : vector<8x32xf32>
    %167 = vector.extract_strided_slice %160 {offsets = [0, 32], sizes = [8, 32], strides = [1, 1]} : vector<8x128xf32> to vector<8x32xf32>
    %168 = arith.negf %167 : vector<8x32xf32>
    %169 = math.exp %168 : vector<8x32xf32>
    %cst_40 = arith.constant 1.000000e+00 : f32
    %170 = vector.broadcast %cst_40 : f32 to vector<8x32xf32>
    %171 = arith.addf %170, %169 : vector<8x32xf32>
    %172 = arith.divf %170, %171 : vector<8x32xf32>
    %173 = vector.extract_strided_slice %160 {offsets = [0, 64], sizes = [8, 32], strides = [1, 1]} : vector<8x128xf32> to vector<8x32xf32>
    %174 = math.tanh %173 : vector<8x32xf32>
    %175 = vector.extract_strided_slice %160 {offsets = [0, 96], sizes = [8, 32], strides = [1, 1]} : vector<8x128xf32> to vector<8x32xf32>
    %176 = arith.negf %175 : vector<8x32xf32>
    %177 = math.exp %176 : vector<8x32xf32>
    %cst_41 = arith.constant 1.000000e+00 : f32
    %178 = vector.broadcast %cst_41 : f32 to vector<8x32xf32>
    %179 = arith.addf %178, %177 : vector<8x32xf32>
    %180 = arith.divf %178, %179 : vector<8x32xf32>
    %181 = arith.mulf %172, %153 : vector<8x32xf32>
    %182 = arith.mulf %166, %174 : vector<8x32xf32>
    %183 = arith.addf %181, %182 : vector<8x32xf32>
    %184 = math.tanh %183 : vector<8x32xf32>
    %185 = arith.mulf %180, %184 : vector<8x32xf32>
    %c6_i32 = arith.constant 6 : i32
    %186 = arith.index_cast %c6_i32 : i32 to index
    %c0_42 = arith.constant 0 : index
    %c0_43 = arith.constant 0 : index
    %187 = vector.load %arg2[%186, %c0_42, %c0_43] : memref<8x8x128xf32, #tpu.memory_space<vmem>>, vector<1x8x128xf32>
    %188 = vector.shape_cast %187 : vector<1x8x128xf32> to vector<8x128xf32>
    %cst_44 = arith.constant dense<0.000000e+00> : vector<8x128xf32>
    %189 = tpu.matmul %185, %3, %cst_44 {dimension_numbers = #tpu.dot_dimension_numbers<[1], [0], [0], [1], [0, 0, 1, 1], [], []>} : vector<8x32xf32>, vector<32x128xf32>, vector<8x128xf32> -> vector<8x128xf32>
    %190 = arith.addf %188, %189 : vector<8x128xf32>
    %191 = vector.extract_strided_slice %190 {offsets = [0, 0], sizes = [8, 32], strides = [1, 1]} : vector<8x128xf32> to vector<8x32xf32>
    %192 = arith.negf %191 : vector<8x32xf32>
    %193 = math.exp %192 : vector<8x32xf32>
    %cst_45 = arith.constant 1.000000e+00 : f32
    %194 = vector.broadcast %cst_45 : f32 to vector<8x32xf32>
    %195 = arith.addf %194, %193 : vector<8x32xf32>
    %196 = arith.divf %194, %195 : vector<8x32xf32>
    %197 = vector.extract_strided_slice %190 {offsets = [0, 32], sizes = [8, 32], strides = [1, 1]} : vector<8x128xf32> to vector<8x32xf32>
    %198 = arith.negf %197 : vector<8x32xf32>
    %199 = math.exp %198 : vector<8x32xf32>
    %cst_46 = arith.constant 1.000000e+00 : f32
    %200 = vector.broadcast %cst_46 : f32 to vector<8x32xf32>
    %201 = arith.addf %200, %199 : vector<8x32xf32>
    %202 = arith.divf %200, %201 : vector<8x32xf32>
    %203 = vector.extract_strided_slice %190 {offsets = [0, 64], sizes = [8, 32], strides = [1, 1]} : vector<8x128xf32> to vector<8x32xf32>
    %204 = math.tanh %203 : vector<8x32xf32>
    %205 = vector.extract_strided_slice %190 {offsets = [0, 96], sizes = [8, 32], strides = [1, 1]} : vector<8x128xf32> to vector<8x32xf32>
    %206 = arith.negf %205 : vector<8x32xf32>
    %207 = math.exp %206 : vector<8x32xf32>
    %cst_47 = arith.constant 1.000000e+00 : f32
    %208 = vector.broadcast %cst_47 : f32 to vector<8x32xf32>
    %209 = arith.addf %208, %207 : vector<8x32xf32>
    %210 = arith.divf %208, %209 : vector<8x32xf32>
    %211 = arith.mulf %202, %183 : vector<8x32xf32>
    %212 = arith.mulf %196, %204 : vector<8x32xf32>
    %213 = arith.addf %211, %212 : vector<8x32xf32>
    %214 = math.tanh %213 : vector<8x32xf32>
    %215 = arith.mulf %210, %214 : vector<8x32xf32>
    %c7_i32 = arith.constant 7 : i32
    %216 = arith.index_cast %c7_i32 : i32 to index
    %c0_48 = arith.constant 0 : index
    %c0_49 = arith.constant 0 : index
    %217 = vector.load %arg2[%216, %c0_48, %c0_49] : memref<8x8x128xf32, #tpu.memory_space<vmem>>, vector<1x8x128xf32>
    %218 = vector.shape_cast %217 : vector<1x8x128xf32> to vector<8x128xf32>
    %cst_50 = arith.constant dense<0.000000e+00> : vector<8x128xf32>
    %219 = tpu.matmul %215, %3, %cst_50 {dimension_numbers = #tpu.dot_dimension_numbers<[1], [0], [0], [1], [0, 0, 1, 1], [], []>} : vector<8x32xf32>, vector<32x128xf32>, vector<8x128xf32> -> vector<8x128xf32>
    %220 = arith.addf %218, %219 : vector<8x128xf32>
    %221 = vector.extract_strided_slice %220 {offsets = [0, 0], sizes = [8, 32], strides = [1, 1]} : vector<8x128xf32> to vector<8x32xf32>
    %222 = arith.negf %221 : vector<8x32xf32>
    %223 = math.exp %222 : vector<8x32xf32>
    %cst_51 = arith.constant 1.000000e+00 : f32
    %224 = vector.broadcast %cst_51 : f32 to vector<8x32xf32>
    %225 = arith.addf %224, %223 : vector<8x32xf32>
    %226 = arith.divf %224, %225 : vector<8x32xf32>
    %227 = vector.extract_strided_slice %220 {offsets = [0, 32], sizes = [8, 32], strides = [1, 1]} : vector<8x128xf32> to vector<8x32xf32>
    %228 = arith.negf %227 : vector<8x32xf32>
    %229 = math.exp %228 : vector<8x32xf32>
    %cst_52 = arith.constant 1.000000e+00 : f32
    %230 = vector.broadcast %cst_52 : f32 to vector<8x32xf32>
    %231 = arith.addf %230, %229 : vector<8x32xf32>
    %232 = arith.divf %230, %231 : vector<8x32xf32>
    %233 = vector.extract_strided_slice %220 {offsets = [0, 64], sizes = [8, 32], strides = [1, 1]} : vector<8x128xf32> to vector<8x32xf32>
    %234 = math.tanh %233 : vector<8x32xf32>
    %235 = vector.extract_strided_slice %220 {offsets = [0, 96], sizes = [8, 32], strides = [1, 1]} : vector<8x128xf32> to vector<8x32xf32>
    %236 = arith.negf %235 : vector<8x32xf32>
    %237 = math.exp %236 : vector<8x32xf32>
    %cst_53 = arith.constant 1.000000e+00 : f32
    %238 = vector.broadcast %cst_53 : f32 to vector<8x32xf32>
    %239 = arith.addf %238, %237 : vector<8x32xf32>
    %240 = arith.divf %238, %239 : vector<8x32xf32>
    %241 = arith.mulf %232, %213 : vector<8x32xf32>
    %242 = arith.mulf %226, %234 : vector<8x32xf32>
    %243 = arith.addf %241, %242 : vector<8x32xf32>
    %244 = math.tanh %243 : vector<8x32xf32>
    %245 = arith.mulf %240, %244 : vector<8x32xf32>
    %c8_i32 = arith.constant 8 : i32
    %c0_54 = arith.constant 0 : index
    %c0_55 = arith.constant 0 : index
    %246 = vector.load %arg5[%c0_54, %c0_55] : memref<8x32xf32, #tpu.memory_space<vmem>>, vector<8x32xf32>
    tpu.vector_store %arg5[%c0_54, %c0_55], %245 {strides = array<i32>} : memref<8x32xf32, #tpu.memory_space<vmem>>, vector<8x32xf32>,
    %c0_56 = arith.constant 0 : index
    %c0_57 = arith.constant 0 : index
    %247 = vector.load %arg6[%c0_56, %c0_57] : memref<8x32xf32, #tpu.memory_space<vmem>>, vector<8x32xf32>
    tpu.vector_store %arg6[%c0_56, %c0_57], %243 {strides = array<i32>} : memref<8x32xf32, #tpu.memory_space<vmem>>, vector<8x32xf32>,
    %c0_i32_58 = arith.constant 0 : i32
    %248 = arith.cmpi eq, %arg1, %c0_i32_58 : i32
    %249 = arith.extui %248 : i1 to i32
    %c0_i32_59 = arith.constant 0 : i32
    %250 = arith.cmpi ne, %249, %c0_i32_59 : i32
    scf.if %250 {
      %c0_60 = arith.constant 0 : index
      %c0_61 = arith.constant 0 : index
      %251 = vector.load %arg4[%c0_60, %c0_61] : memref<8x32xf32, #tpu.memory_space<vmem>>, vector<8x32xf32>
      tpu.vector_store %arg4[%c0_60, %c0_61], %245 {strides = array<i32>} : memref<8x32xf32, #tpu.memory_space<vmem>>, vector<8x32xf32>,
    } else {
    }
    return
  }
  func.func @transform_0(%arg0: i32, %arg1: i32) -> (i32, i32, i32) {
    %c0_i32 = arith.constant 0 : i32
    %c0_i32_0 = arith.constant 0 : i32
    return %arg1, %arg0, %c0_i32 : i32, i32, i32
  }
  func.func @transform_1(%arg0: i32, %arg1: i32) -> (i32, i32) {
    %c0_i32 = arith.constant 0 : i32
    %c0_i32_0 = arith.constant 0 : i32
    %c0_i32_1 = arith.constant 0 : i32
    return %c0_i32, %c0_i32_0 : i32, i32
  }
  func.func @transform_2(%arg0: i32, %arg1: i32) -> (i32, i32) {
    %c0_i32 = arith.constant 0 : i32
    %c0_i32_0 = arith.constant 0 : i32
    return %arg0, %c0_i32 : i32, i32
  }
}

</mosaic_0001>

<bundles_post_ra>
// kernel: tpu_custom_call.1
= control target key start
LH: loop header
LB: loop body
LE: loop exit
PB: predicated region body
PF: predicated region fallthrough
CT: control target
= control target key end

     0   :  { %7 = vsyncpa [#allocation5], 0  ;;  %s857_s0 = inlined_call_operand.hbm [shape: f32[8,8,128], index: 0, kind: input, shape index: {}]   ;;  %s858_s1 = inlined_call_operand.hbm [shape: f32[32,128], index: 1, kind: input, shape index: {}]   ;;  %s859_s2 = inlined_call_operand.hbm [shape: f32[8,32], index: 2, kind: output, shape index: {}]  }
   0x1   :  { %8 = vsyncpa [#allocation8], 0 }
   0x2   :  { %9 = vsyncpa [#allocation6], 0  ;;  %s14_s11 = sshll.u32 %s857_s0, 4  ;;  %s778_s12 = smov [#allocation4]   ;;  %s15_s11 = int_to_ptr.hbm [resolvable:$true] %s14_s11 }
   0x3   :  { %s16_s13 = sshll.u32 %s778_s12, 4  ;;  %s27_s16 = sshll.u32 %s858_s1, 4  ;;  %s17_s13 = int_to_ptr.vmem [resolvable:$true] %s16_s13  ;;  %s28_s16 = int_to_ptr.hbm [resolvable:$true] %s27_s16 }
   0x4   :  { %s779_s17 = smov 128   ;;  %s780_s18 = smov 8  }
   0x5   :  { %22 = dma.hbm_to_vmem [thread:$0]  %s15_s11, 1024, %s17_s13, [#allocation5], %s779_s17, %s779_s17, %s780_s18  }
   0x6   :  { %s781_s19 = smov [#allocation7]  }
   0x7   :  { %s29_s20 = sshll.u32 %s781_s19, 4  ;;  %s30_s20 = int_to_ptr.vmem [resolvable:$true] %s29_s20 }
   0x8   :  { %35 = dma.hbm_to_vmem [thread:$0]  %s28_s16, 512, %s30_s20, [#allocation8], %s779_s17, %s779_s17, %s780_s18  }
   0x9   :  { %772 = dma.done.wait [#allocation5], 1024  }
   0xa   :  { %773 = vsyncadd [#allocation5], 4294966272 }
   0xb   :  { %774 = dma.done.wait [#allocation8], 512  }
   0xc   :  { %775 = vsyncadd [#allocation8], 4294966784  ;;  %vm48_vm0 = vcmask 261120   ;;  %v782_v0 = vmov 0.0   ;;  %v54_v1 = vld [vmem:[#allocation7 + $0x18] sm:$0xff]  ;;  %v53_v2 = vld [vmem:[#allocation7 + $0x10] sm:$0xff] }
   0xd   :  { %49 = vst.msk [vmem:[#allocation2] sm:$0xff] %vm48_vm0, %v782_v0  ;;  %74 = vmatpush.msra.mxu0 %v54_v1  ;;  %143 = vmatpush.msra.mxu1 %v54_v1  ;;  %v52_v3 = vld [vmem:[#allocation7 + $0x8] sm:$0xff]  ;;  %v51_v4 = vld [vmem:[#allocation7] sm:$0xff]  ;;  %s783_s0 = smov 64   ;;  %s784_s1 = smov 32   ;;  %v190_v60 = vld [vmem:[#allocation4 + $0x10] sm:$0xff] }
   0xe   :  { %50 = vst.msk [vmem:[#allocation3] sm:$0xff] %vm48_vm0, %v782_v0  ;;  %208 = vmatpush.msra.mxu2 %v54_v1  ;;  %273 = vmatpush.msra.mxu3 %v54_v1  ;;  %v57_v6 = vld [vmem:[#allocation4] sm:$0xff]  ;;  %v125_v34 = vld [vmem:[#allocation4 + $0x8] sm:$0xff]  ;;  %s785_s21 = smov 96   ;;  %s786_s22 = smov [#allocation9]  }
   0xf   :  { %75 = vmatpush.msra.mxu0 %v53_v2  ;;  %144 = vmatpush.msra.mxu1 %v53_v2  ;;  %s598_s23 = sshll.u32 %s786_s22, 4  ;;  %s600_s26 = sshll.u32 %s859_s2, 4  ;;  %s599_s23 = int_to_ptr.vmem [resolvable:$true] %s598_s23  ;;  %s601_s26 = int_to_ptr.hbm [resolvable:$true] %s600_s26 }
  0x10   :  { %209 = vmatpush.msra.mxu2 %v53_v2  ;;  %274 = vmatpush.msra.mxu3 %v53_v2 }
  0x11   :  { %76 = vmatpush.msra.mxu0 %v52_v3  ;;  %145 = vmatpush.msra.mxu1 %v52_v3 }
  0x12   :  { %210 = vmatpush.msra.mxu2 %v52_v3  ;;  %275 = vmatpush.msra.mxu3 %v52_v3 }
  0x13   :  { %77 = vmatpush.msra.mxu0 %v51_v4  ;;  %146 = vmatpush.msra.mxu1 %v51_v4 }
  0x14   :  { %v55_v5 = vld [vmem:[#allocation2] sm:$0xff]  ;;  %211 = vmatpush.msra.mxu2 %v51_v4  ;;  %276 = vmatpush.msra.mxu3 %v51_v4 }
  0x15   :  { %611 = vmatmul.msk.f32.vlgmr.msra.gmra.mxu0 %vm48_vm0, %v55_v5  ;;  %403 = vmatpush.msrb.mxu1 %v54_v1  ;;  %v56_v10 = vld [vmem:[#allocation3] sm:$0xff] }
  0x16   :  { %338 = vmatpush.msrb.mxu0 %v54_v1  ;;  %468 = vmatpush.msrb.mxu2 %v54_v1 }
  0x17   :  { %533 = vmatpush.msrb.mxu3 %v54_v1  ;;  %404 = vmatpush.msrb.mxu1 %v53_v2 }
  0x18   :  { %339 = vmatpush.msrb.mxu0 %v53_v2  ;;  %469 = vmatpush.msrb.mxu2 %v53_v2 }
  0x19   :  { %534 = vmatpush.msrb.mxu3 %v53_v2  ;;  %405 = vmatpush.msrb.mxu1 %v52_v3 }
  0x1a   :  { %340 = vmatpush.msrb.mxu0 %v52_v3  ;;  %470 = vmatpush.msrb.mxu2 %v52_v3 }
  0x1b   :  { %535 = vmatpush.msrb.mxu3 %v52_v3  ;;  %406 = vmatpush.msrb.mxu1 %v51_v4 }
  0x1c   :  { %341 = vmatpush.msrb.mxu0 %v51_v4  ;;  %471 = vmatpush.msrb.mxu2 %v51_v4 }
  0x1d   :  { %536 = vmatpush.msrb.mxu3 %v51_v4 }
  0x92   :  { %v79_v7 = vpop.f32.mrf.mxu0 }
  0x93   :  { %v82_v8 = vadd.f32 %v79_v7, %v57_v6 }
  0x95   :  { %636 = vtanh.f32 %v82_v8  ;;  %v612_v11 = vmul.f32 -1.442695, %v82_v8 }
  0x97   :  { %638 = vpow2.f32 %v612_v11 }
  0x9b   :  { %v637_v9 = vpop.eup %636 }
  0x9c   :  { %109 = vrot.lane.b32.xlu0 %v637_v9, %s783_s0 }
  0x9d   :  { %v639_v12 = vpop.eup %638 }
  0x9e   :  { %v86_v13 = vadd.f32 1.0, %v639_v12 }
  0xa0   :  { %640 = vrcp.f32 %v86_v13  ;;  %v98_v19 = vand.u32 2147483648, %v86_v13  ;;  %vm92_vm2 = vweird.f32 %v86_v13  ;;  %v96_v20 = vand.u32 2147483647, %v86_v13 }
  0xa2   :  { %v99_v22 = vor.u32 1.1754944e-38, %v98_v19  ;;  %vm97_vm4 = vcmp.eq.f32.partialorder %v96_v20, 8.507059e+37 }
  0xa4   :  { %104 = vrot.lane.b32.xlu0 %v56_v10, %s784_s1 }
  0xa6   :  { %v641_v14 = vpop.eup %640 }
  0xa7   :  { %v88_v15 = vmul.f32 %v641_v14, %v86_v13  ;;  %vm93_vm1 = vweird.f32 %v641_v14 }
  0xa8   :  { %vm94_vm3 = vmor %vm92_vm2, %vm93_vm1 }
  0xa9   :  { %v89_v16 = vsub.f32 1.0, %v88_v15 }
  0xab   :  { %v90_v17 = vmul.f32 %v641_v14, %v89_v16 }
  0xad   :  { %v91_v18 = vadd.f32 %v641_v14, %v90_v17 }
  0xaf   :  { %v95_v21 = vsel %vm94_vm3, %v641_v14, %v91_v18 }
  0xb0   :  { %v100_v24 = vsel %vm97_vm4, %v99_v22, %v95_v21  ;;  %v255_v22 = vld [vmem:[#allocation4 + $0x18] sm:$0xff] }
 0x10e   :  { %v110_v23 = vpop.permute.xlu0 %109 }
 0x10f   :  { %v112_v25 = vmul.f32 %v110_v23, %v100_v24 }
 0x111   :  { %114 = vrot.lane.b32.xlu1 %v112_v25, %s784_s1 }
 0x116   :  { %v105_v26 = vpop.permute.xlu0 %104 }
 0x117   :  { %v107_v27 = vmul.f32 %v105_v26, %v100_v24 }
 0x183   :  { %v115_v28 = vpop.permute.xlu1 %114 }
 0x184   :  { %v117_v29 = vadd.f32 %v115_v28, %v107_v27 }
 0x186   :  { %642 = vtanh.f32 %v117_v29 }
 0x18c   :  { %v643_v30 = vpop.eup %642 }
 0x18d   :  { %120 = vrot.lane.b32.xlu1 %v643_v30, %s783_s0 }
 0x1ff   :  { %v121_v31 = vpop.permute.xlu1 %120 }
 0x200   :  { %v123_v32 = vmul.f32 %v121_v31, %v100_v24 }
 0x202   :  { %127 = vrot.lane.b32.xlu2 %v123_v32, %s784_s1 }
 0x25c   :  { %v128_v33 = vpop.permute.xlu2 %127 }
 0x25d   :  { %613 = vmatmul.msk.f32.vlgmr.msra.gmra.mxu1 %vm48_vm0, %v128_v33 }
 0x2da   :  { %v148_v35 = vpop.f32.mrf.mxu1 }
 0x2db   :  { %v151_v36 = vadd.f32 %v148_v35, %v125_v34 }
 0x2dd   :  { %644 = vtanh.f32 %v151_v36  ;;  %v614_v38 = vmul.f32 -1.442695, %v151_v36 }
 0x2df   :  { %646 = vpow2.f32 %v614_v38 }
 0x2e3   :  { %v645_v37 = vpop.eup %644 }
 0x2e4   :  { %174 = vrot.lane.b32.xlu2 %v645_v37, %s783_s0 }
 0x2e5   :  { %v647_v39 = vpop.eup %646 }
 0x2e6   :  { %v155_v40 = vadd.f32 1.0, %v647_v39 }
 0x2e8   :  { %648 = vrcp.f32 %v155_v40  ;;  %v167_v46 = vand.u32 2147483648, %v155_v40  ;;  %vm161_vm6 = vweird.f32 %v155_v40  ;;  %v165_v47 = vand.u32 2147483647, %v155_v40 }
 0x2ea   :  { %v168_v49 = vor.u32 1.1754944e-38, %v167_v46  ;;  %vm166_vm8 = vcmp.eq.f32.partialorder %v165_v47, 8.507059e+37 }
 0x2ee   :  { %v649_v41 = vpop.eup %648 }
 0x2ef   :  { %v157_v42 = vmul.f32 %v649_v41, %v155_v40  ;;  %vm162_vm5 = vweird.f32 %v649_v41 }
 0x2f0   :  { %vm163_vm7 = vmor %vm161_vm6, %vm162_vm5 }
 0x2f1   :  { %v158_v43 = vsub.f32 1.0, %v157_v42 }
 0x2f3   :  { %v159_v44 = vmul.f32 %v649_v41, %v158_v43 }
 0x2f5   :  { %v160_v45 = vadd.f32 %v649_v41, %v159_v44 }
 0x2f7   :  { %v164_v48 = vsel %vm163_vm7, %v649_v41, %v160_v45 }
 0x2f8   :  { %v169_v51 = vsel %vm166_vm8, %v168_v49, %v164_v48  ;;  %v320_v48 = vld [vmem:[#allocation4 + $0x20] sm:$0xff] }
 0x2f9   :  { %v172_v53 = vmul.f32 %v169_v51, %v117_v29 }
 0x33e   :  { %v175_v50 = vpop.permute.xlu2 %174 }
 0x33f   :  { %v177_v52 = vmul.f32 %v175_v50, %v169_v51 }
 0x341   :  { %179 = vrot.lane.b32.xlu0 %v177_v52, %s784_s1 }
 0x3b3   :  { %v180_v54 = vpop.permute.xlu0 %179 }
 0x3b4   :  { %v182_v55 = vadd.f32 %v180_v54, %v172_v53 }
 0x3b6   :  { %650 = vtanh.f32 %v182_v55 }
 0x3bc   :  { %v651_v56 = vpop.eup %650 }
 0x3bd   :  { %185 = vrot.lane.b32.xlu1 %v651_v56, %s783_s0 }
 0x42f   :  { %v186_v57 = vpop.permute.xlu1 %185 }
 0x430   :  { %v188_v58 = vmul.f32 %v186_v57, %v169_v51 }
 0x432   :  { %192 = vrot.lane.b32.xlu2 %v188_v58, %s784_s1 }
 0x48c   :  { %v193_v59 = vpop.permute.xlu2 %192 }
 0x48d   :  { %615 = vmatmul.msk.f32.vlgmr.msra.gmra.mxu2 %vm48_vm0, %v193_v59 }
 0x510   :  { %v213_v61 = vpop.f32.mrf.mxu2 }
 0x511   :  { %v216_v62 = vadd.f32 %v213_v61, %v190_v60 }
 0x513   :  { %652 = vtanh.f32 %v216_v62  ;;  %v616_v0 = vmul.f32 -1.442695, %v216_v62 }
 0x515   :  { %654 = vpow2.f32 %v616_v0 }
 0x519   :  { %v653_v63 = vpop.eup %652 }
 0x51a   :  { %239 = vrot.lane.b32.xlu0 %v653_v63, %s783_s0 }
 0x51b   :  { %v655_v1 = vpop.eup %654 }
 0x51c   :  { %v220_v2 = vadd.f32 1.0, %v655_v1 }
 0x51e   :  { %656 = vrcp.f32 %v220_v2  ;;  %v232_v8 = vand.u32 2147483648, %v220_v2  ;;  %vm226_vm10 = vweird.f32 %v220_v2  ;;  %v230_v9 = vand.u32 2147483647, %v220_v2 }
 0x520   :  { %v233_v11 = vor.u32 1.1754944e-38, %v232_v8  ;;  %vm231_vm12 = vcmp.eq.f32.partialorder %v230_v9, 8.507059e+37 }
 0x524   :  { %v657_v3 = vpop.eup %656 }
 0x525   :  { %v222_v4 = vmul.f32 %v657_v3, %v220_v2  ;;  %vm227_vm9 = vweird.f32 %v657_v3 }
 0x526   :  { %vm228_vm11 = vmor %vm226_vm10, %vm227_vm9 }
 0x527   :  { %v223_v5 = vsub.f32 1.0, %v222_v4 }
 0x529   :  { %v224_v6 = vmul.f32 %v657_v3, %v223_v5 }
 0x52b   :  { %v225_v7 = vadd.f32 %v657_v3, %v224_v6 }
 0x52d   :  { %v229_v10 = vsel %vm228_vm11, %v657_v3, %v225_v7 }
 0x52e   :  { %v234_v13 = vsel %vm231_vm12, %v233_v11, %v229_v10  ;;  %v385_v10 = vld [vmem:[#allocation4 + $0x28] sm:$0xff] }
 0x52f   :  { %v237_v15 = vmul.f32 %v234_v13, %v182_v55 }
 0x58c   :  { %v240_v12 = vpop.permute.xlu0 %239 }
 0x58d   :  { %v242_v14 = vmul.f32 %v240_v12, %v234_v13 }
 0x58f   :  { %244 = vrot.lane.b32.xlu1 %v242_v14, %s784_s1 }
 0x601   :  { %v245_v16 = vpop.permute.xlu1 %244 }
 0x602   :  { %v247_v17 = vadd.f32 %v245_v16, %v237_v15 }
 0x604   :  { %658 = vtanh.f32 %v247_v17 }
 0x60a   :  { %v659_v18 = vpop.eup %658 }
 0x60b   :  { %250 = vrot.lane.b32.xlu2 %v659_v18, %s783_s0 }
 0x665   :  { %v251_v19 = vpop.permute.xlu2 %250 }
 0x666   :  { %v253_v20 = vmul.f32 %v251_v19, %v234_v13 }
 0x668   :  { %257 = vrot.lane.b32.xlu0 %v253_v20, %s784_s1 }
 0x6da   :  { %v258_v21 = vpop.permute.xlu0 %257 }
 0x6db   :  { %617 = vmatmul.msk.f32.vlgmr.msra.gmra.mxu3 %vm48_vm0, %v258_v21 }
 0x75e   :  { %v278_v23 = vpop.f32.mrf.mxu3 }
 0x75f   :  { %v281_v24 = vadd.f32 %v278_v23, %v255_v22 }
 0x761   :  { %660 = vtanh.f32 %v281_v24  ;;  %v618_v26 = vmul.f32 -1.442695, %v281_v24 }
 0x763   :  { %662 = vpow2.f32 %v618_v26 }
 0x767   :  { %v661_v25 = vpop.eup %660 }
 0x768   :  { %304 = vrot.lane.b32.xlu1 %v661_v25, %s783_s0 }
 0x769   :  { %v663_v27 = vpop.eup %662 }
 0x76a   :  { %v285_v28 = vadd.f32 1.0, %v663_v27 }
 0x76c   :  { %664 = vrcp.f32 %v285_v28  ;;  %v297_v34 = vand.u32 2147483648, %v285_v28  ;;  %vm291_vm14 = vweird.f32 %v285_v28  ;;  %v295_v35 = vand.u32 2147483647, %v285_v28 }
 0x76e   :  { %v298_v37 = vor.u32 1.1754944e-38, %v297_v34  ;;  %vm296_vm1 = vcmp.eq.f32.partialorder %v295_v35, 8.507059e+37 }
 0x772   :  { %v665_v29 = vpop.eup %664 }
 0x773   :  { %v287_v30 = vmul.f32 %v665_v29, %v285_v28  ;;  %vm292_vm13 = vweird.f32 %v665_v29 }
 0x774   :  { %vm293_vm15 = vmor %vm291_vm14, %vm292_vm13 }
 0x775   :  { %v288_v31 = vsub.f32 1.0, %v287_v30 }
 0x777   :  { %v289_v32 = vmul.f32 %v665_v29, %v288_v31 }
 0x779   :  { %v290_v33 = vadd.f32 %v665_v29, %v289_v32 }
 0x77b   :  { %v294_v36 = vsel %vm293_vm15, %v665_v29, %v290_v33 }
 0x77c   :  { %v299_v39 = vsel %vm296_vm1, %v298_v37, %v294_v36  ;;  %v450_v36 = vld [vmem:[#allocation4 + $0x30] sm:$0xff] }
 0x77d   :  { %v302_v41 = vmul.f32 %v299_v39, %v247_v17 }
 0x7da   :  { %v305_v38 = vpop.permute.xlu1 %304 }
 0x7db   :  { %v307_v40 = vmul.f32 %v305_v38, %v299_v39 }
 0x7dd   :  { %309 = vrot.lane.b32.xlu2 %v307_v40, %s784_s1 }
 0x837   :  { %v310_v42 = vpop.permute.xlu2 %309 }
 0x838   :  { %v312_v43 = vadd.f32 %v310_v42, %v302_v41 }
 0x83a   :  { %666 = vtanh.f32 %v312_v43 }
 0x840   :  { %v667_v44 = vpop.eup %666 }
 0x841   :  { %315 = vrot.lane.b32.xlu0 %v667_v44, %s783_s0 }
 0x8b3   :  { %v316_v45 = vpop.permute.xlu0 %315 }
 0x8b4   :  { %v318_v46 = vmul.f32 %v316_v45, %v299_v39 }
 0x8b6   :  { %322 = vrot.lane.b32.xlu1 %v318_v46, %s784_s1 }
 0x928   :  { %v323_v47 = vpop.permute.xlu1 %322 }
 0x929   :  { %619 = vmatmul.msk.f32.vlgmr.msrb.gmra.mxu0 %vm48_vm0, %v323_v47 }
 0x9a6   :  { %v343_v49 = vpop.f32.mrf.mxu0 }
 0x9a7   :  { %v346_v50 = vadd.f32 %v343_v49, %v320_v48 }
 0x9a9   :  { %668 = vtanh.f32 %v346_v50  ;;  %v620_v52 = vmul.f32 -1.442695, %v346_v50 }
 0x9ab   :  { %670 = vpow2.f32 %v620_v52 }
 0x9af   :  { %v669_v51 = vpop.eup %668 }
 0x9b0   :  { %369 = vrot.lane.b32.xlu2 %v669_v51, %s783_s0 }
 0x9b1   :  { %v671_v53 = vpop.eup %670 }
 0x9b2   :  { %v350_v54 = vadd.f32 1.0, %v671_v53 }
 0x9b4   :  { %672 = vrcp.f32 %v350_v54  ;;  %v362_v60 = vand.u32 2147483648, %v350_v54  ;;  %vm356_vm3 = vweird.f32 %v350_v54  ;;  %v360_v61 = vand.u32 2147483647, %v350_v54 }
 0x9b6   :  { %v363_v63 = vor.u32 1.1754944e-38, %v362_v60  ;;  %vm361_vm5 = vcmp.eq.f32.partialorder %v360_v61, 8.507059e+37 }
 0x9ba   :  { %v673_v55 = vpop.eup %672 }
 0x9bb   :  { %v352_v56 = vmul.f32 %v673_v55, %v350_v54  ;;  %vm357_vm2 = vweird.f32 %v673_v55 }
 0x9bc   :  { %vm358_vm4 = vmor %vm356_vm3, %vm357_vm2 }
 0x9bd   :  { %v353_v57 = vsub.f32 1.0, %v352_v56 }
 0x9bf   :  { %v354_v58 = vmul.f32 %v673_v55, %v353_v57 }
 0x9c1   :  { %v355_v59 = vadd.f32 %v673_v55, %v354_v58 }
 0x9c3   :  { %v359_v62 = vsel %vm358_vm4, %v673_v55, %v355_v59 }
 0x9c4   :  { %v364_v1 = vsel %vm361_vm5, %v363_v63, %v359_v62  ;;  %v515_v62 = vld [vmem:[#allocation4 + $0x38] sm:$0xff] }
 0x9c5   :  { %v367_v3 = vmul.f32 %v364_v1, %v312_v43 }
 0xa0a   :  { %v370_v0 = vpop.permute.xlu2 %369 }
 0xa0b   :  { %v372_v2 = vmul.f32 %v370_v0, %v364_v1 }
 0xa0d   :  { %374 = vrot.lane.b32.xlu0 %v372_v2, %s784_s1 }
 0xa7f   :  { %v375_v4 = vpop.permute.xlu0 %374 }
 0xa80   :  { %v377_v5 = vadd.f32 %v375_v4, %v367_v3 }
 0xa82   :  { %674 = vtanh.f32 %v377_v5 }
 0xa88   :  { %v675_v6 = vpop.eup %674 }
 0xa89   :  { %380 = vrot.lane.b32.xlu1 %v675_v6, %s783_s0 }
 0xafb   :  { %v381_v7 = vpop.permute.xlu1 %380 }
 0xafc   :  { %v383_v8 = vmul.f32 %v381_v7, %v364_v1 }
 0xafe   :  { %387 = vrot.lane.b32.xlu2 %v383_v8, %s784_s1 }
 0xb58   :  { %v388_v9 = vpop.permute.xlu2 %387 }
 0xb59   :  { %621 = vmatmul.msk.f32.vlgmr.msrb.gmra.mxu1 %vm48_vm0, %v388_v9 }
 0xbd6   :  { %v408_v11 = vpop.f32.mrf.mxu1 }
 0xbd7   :  { %v411_v12 = vadd.f32 %v408_v11, %v385_v10 }
 0xbd9   :  { %676 = vtanh.f32 %v411_v12  ;;  %v622_v14 = vmul.f32 -1.442695, %v411_v12 }
 0xbdb   :  { %678 = vpow2.f32 %v622_v14 }
 0xbdf   :  { %v677_v13 = vpop.eup %676 }
 0xbe0   :  { %434 = vrot.lane.b32.xlu0 %v677_v13, %s783_s0 }
 0xbe1   :  { %v679_v15 = vpop.eup %678 }
 0xbe2   :  { %v415_v16 = vadd.f32 1.0, %v679_v15 }
 0xbe4   :  { %680 = vrcp.f32 %v415_v16  ;;  %v427_v22 = vand.u32 2147483648, %v415_v16  ;;  %vm421_vm7 = vweird.f32 %v415_v16  ;;  %v425_v23 = vand.u32 2147483647, %v415_v16 }
 0xbe6   :  { %v428_v25 = vor.u32 1.1754944e-38, %v427_v22  ;;  %vm426_vm9 = vcmp.eq.f32.partialorder %v425_v23, 8.507059e+37 }
 0xbea   :  { %v681_v17 = vpop.eup %680 }
 0xbeb   :  { %v417_v18 = vmul.f32 %v681_v17, %v415_v16  ;;  %vm422_vm6 = vweird.f32 %v681_v17 }
 0xbec   :  { %vm423_vm8 = vmor %vm421_vm7, %vm422_vm6 }
 0xbed   :  { %v418_v19 = vsub.f32 1.0, %v417_v18 }
 0xbef   :  { %v419_v20 = vmul.f32 %v681_v17, %v418_v19 }
 0xbf1   :  { %v420_v21 = vadd.f32 %v681_v17, %v419_v20 }
 0xbf3   :  { %v424_v24 = vsel %vm423_vm8, %v681_v17, %v420_v21 }
 0xbf4   :  { %v429_v27 = vsel %vm426_vm9, %v428_v25, %v424_v24 }
 0xbf5   :  { %v432_v29 = vmul.f32 %v429_v27, %v377_v5 }
 0xc52   :  { %v435_v26 = vpop.permute.xlu0 %434 }
 0xc53   :  { %v437_v28 = vmul.f32 %v435_v26, %v429_v27 }
 0xc55   :  { %439 = vrot.lane.b32.xlu1 %v437_v28, %s784_s1 }
 0xcc7   :  { %v440_v30 = vpop.permute.xlu1 %439 }
 0xcc8   :  { %v442_v31 = vadd.f32 %v440_v30, %v432_v29 }
 0xcca   :  { %682 = vtanh.f32 %v442_v31 }
 0xcd0   :  { %v683_v32 = vpop.eup %682 }
 0xcd1   :  { %445 = vrot.lane.b32.xlu2 %v683_v32, %s783_s0 }
 0xd2b   :  { %v446_v33 = vpop.permute.xlu2 %445 }
 0xd2c   :  { %v448_v34 = vmul.f32 %v446_v33, %v429_v27 }
 0xd2e   :  { %452 = vrot.lane.b32.xlu0 %v448_v34, %s784_s1 }
 0xda0   :  { %v453_v35 = vpop.permute.xlu0 %452 }
 0xda1   :  { %623 = vmatmul.msk.f32.vlgmr.msrb.gmra.mxu2 %vm48_vm0, %v453_v35 }
 0xe24   :  { %v473_v37 = vpop.f32.mrf.mxu2 }
 0xe25   :  { %v476_v38 = vadd.f32 %v473_v37, %v450_v36 }
 0xe27   :  { %684 = vtanh.f32 %v476_v38  ;;  %v624_v40 = vmul.f32 -1.442695, %v476_v38 }
 0xe29   :  { %686 = vpow2.f32 %v624_v40 }
 0xe2d   :  { %v685_v39 = vpop.eup %684 }
 0xe2e   :  { %499 = vrot.lane.b32.xlu1 %v685_v39, %s783_s0 }
 0xe2f   :  { %v687_v41 = vpop.eup %686 }
 0xe30   :  { %v480_v42 = vadd.f32 1.0, %v687_v41 }
 0xe32   :  { %688 = vrcp.f32 %v480_v42  ;;  %v492_v48 = vand.u32 2147483648, %v480_v42  ;;  %vm486_vm11 = vweird.f32 %v480_v42  ;;  %v490_v49 = vand.u32 2147483647, %v480_v42 }
 0xe34   :  { %v493_v51 = vor.u32 1.1754944e-38, %v492_v48  ;;  %vm491_vm13 = vcmp.eq.f32.partialorder %v490_v49, 8.507059e+37 }
 0xe38   :  { %v689_v43 = vpop.eup %688 }
 0xe39   :  { %v482_v44 = vmul.f32 %v689_v43, %v480_v42  ;;  %vm487_vm10 = vweird.f32 %v689_v43 }
 0xe3a   :  { %vm488_vm12 = vmor %vm486_vm11, %vm487_vm10 }
 0xe3b   :  { %v483_v45 = vsub.f32 1.0, %v482_v44 }
 0xe3d   :  { %v484_v46 = vmul.f32 %v689_v43, %v483_v45 }
 0xe3f   :  { %v485_v47 = vadd.f32 %v689_v43, %v484_v46 }
 0xe41   :  { %v489_v50 = vsel %vm488_vm12, %v689_v43, %v485_v47 }
 0xe42   :  { %v494_v53 = vsel %vm491_vm13, %v493_v51, %v489_v50 }
 0xe43   :  { %v497_v55 = vmul.f32 %v494_v53, %v442_v31 }
 0xea0   :  { %v500_v52 = vpop.permute.xlu1 %499 }
 0xea1   :  { %v502_v54 = vmul.f32 %v500_v52, %v494_v53 }
 0xea3   :  { %504 = vrot.lane.b32.xlu2 %v502_v54, %s784_s1 }
 0xefd   :  { %v505_v56 = vpop.permute.xlu2 %504 }
 0xefe   :  { %v507_v57 = vadd.f32 %v505_v56, %v497_v55 }
 0xf00   :  { %690 = vtanh.f32 %v507_v57 }
 0xf06   :  { %v691_v58 = vpop.eup %690 }
 0xf07   :  { %510 = vrot.lane.b32.xlu0 %v691_v58, %s783_s0 }
 0xf79   :  { %v511_v59 = vpop.permute.xlu0 %510 }
 0xf7a   :  { %v513_v60 = vmul.f32 %v511_v59, %v494_v53 }
 0xf7c   :  { %517 = vrot.lane.b32.xlu1 %v513_v60, %s784_s1 }
 0xfee   :  { %v518_v61 = vpop.permute.xlu1 %517 }
 0xfef   :  { %625 = vmatmul.msk.f32.vlgmr.msrb.gmra.mxu3 %vm48_vm0, %v518_v61 }
0x1072   :  { %v538_v63 = vpop.f32.mrf.mxu3 }
0x1073   :  { %v541_v0 = vadd.f32 %v538_v63, %v515_v62 }
0x1075   :  { %692 = vtanh.f32 %v541_v0  ;;  %v626_v2 = vmul.f32 -1.442695, %v541_v0 }
0x1077   :  { %694 = vpow2.f32 %v626_v2 }
0x107b   :  { %v693_v1 = vpop.eup %692 }
0x107c   :  { %564 = vrot.lane.b32.xlu2 %v693_v1, %s783_s0 }
0x107d   :  { %v695_v3 = vpop.eup %694 }
0x107e   :  { %v545_v4 = vadd.f32 1.0, %v695_v3 }
0x1080   :  { %696 = vrcp.f32 %v545_v4  ;;  %v557_v10 = vand.u32 2147483648, %v545_v4  ;;  %vm551_vm15 = vweird.f32 %v545_v4  ;;  %v555_v11 = vand.u32 2147483647, %v545_v4 }
0x1082   :  { %v558_v13 = vor.u32 1.1754944e-38, %v557_v10  ;;  %vm556_vm2 = vcmp.eq.f32.partialorder %v555_v11, 8.507059e+37 }
0x1086   :  { %v697_v5 = vpop.eup %696 }
0x1087   :  { %v547_v6 = vmul.f32 %v697_v5, %v545_v4  ;;  %vm552_vm14 = vweird.f32 %v697_v5 }
0x1088   :  { %vm553_vm1 = vmor %vm551_vm15, %vm552_vm14 }
0x1089   :  { %v548_v7 = vsub.f32 1.0, %v547_v6 }
0x108b   :  { %v549_v8 = vmul.f32 %v697_v5, %v548_v7 }
0x108d   :  { %v550_v9 = vadd.f32 %v697_v5, %v549_v8 }
0x108f   :  { %v554_v12 = vsel %vm553_vm1, %v697_v5, %v550_v9 }
0x1090   :  { %v559_v15 = vsel %vm556_vm2, %v558_v13, %v554_v12 }
0x1091   :  { %v562_v17 = vmul.f32 %v559_v15, %v507_v57 }
0x10d6   :  { %v565_v14 = vpop.permute.xlu2 %564 }
0x10d7   :  { %v567_v16 = vmul.f32 %v565_v14, %v559_v15 }
0x10d9   :  { %569 = vrot.lane.b32.xlu0 %v567_v16, %s784_s1 }
0x114b   :  { %v570_v18 = vpop.permute.xlu0 %569 }
0x114c   :  { %v572_v19 = vadd.f32 %v570_v18, %v562_v17 }
0x114e   :  { %698 = vtanh.f32 %v572_v19  ;;  %585 = vrot.lane.b32.xlu0 %v572_v19, %s785_s21 }
0x1154   :  { %v699_v20 = vpop.eup %698 }
0x1155   :  { %575 = vrot.lane.b32.xlu1 %v699_v20, %s783_s0 }
0x11c0   :  { %v586_v21 = vpop.permute.xlu0 %585 }
0x11c1   :  { %588 = vst.msk [vmem:[#allocation3] sm:$0xff] %vm48_vm0, %v586_v21 }
0x11c7   :  { %v576_v22 = vpop.permute.xlu1 %575 }
0x11c8   :  { %v578_v23 = vmul.f32 %v576_v22, %v559_v15 }
0x11ca   :  { %580 = vrot.lane.b32.xlu2 %v578_v23, %s784_s1 }
0x1224   :  { %v581_v24 = vpop.permute.xlu2 %580 }
0x1225   :  { %583 = vst.msk [vmem:[#allocation2] sm:$0xff] %vm48_vm0, %v581_v24 }
0x1226   :  { %592 = vst.msk [vmem:[#allocation9] sm:$0xff] %vm48_vm0, %v581_v24 }
0x1227   :  { %603 = dma.vmem_to_hbm [thread:$0]  %s599_s23, 128, %s601_s26, [#allocation6]  }
0x1228   :  { %776 = dma.done.wait [#allocation6], 128  }
0x1229   :  { %777 = vsyncadd [#allocation6], 4294967168 }
0x122a   :  { %608 = vsyncpa [#allocation5], 1 }
0x122b   :  { %609 = vsyncpa [#allocation8], 1 }
0x122c   :  { %610 = vsyncpa [#allocation6], 1 }

</bundles_post_ra>
